<compile_context>
chip_gen: v7x
topology: tpu7x:2x2x1
jax: 0.10.0
libtpu: 0.0.40
codegen_flags: <defaults>
</compile_context>

<pallas_src>
import functools
import math

import jax
import jax.numpy as jnp
from jax.experimental import pallas as pl
from jax.experimental.pallas import tpu as pltpu

_MXU_DTYPE = jnp.bfloat16


def _gated_xattn_kernel(x_ref, f_ref,
                        wq_ref, wkv_ref, wo_ref, wffn_ref,
                        bq_ref, bkv_ref, bo_ref, bffn_ref,
                        o_ref,
                        *, num_heads, head_dim, q_len, kv_len):
    """One grid step = one batch block.  All heads are processed inside the step."""
    E = num_heads * head_dim
    rows_q = x_ref.shape[0]          # Bb * Lq  (rows already folded on the host)
    bb = rows_q // q_len

    x2d = x_ref[...]                 # (rows_q, E)  bf16
    f2d = f_ref[...]                 # (rows_k, E)  bf16

    # Fused full-width projections (f32 accumulation).  The softmax scale is already
    # folded into wq/bq on the host; K and V share one MXU pass over f2d.
    q = jnp.dot(x2d, wq_ref[...], preferred_element_type=jnp.float32) + bq_ref[...]
    kv = jnp.dot(f2d, wkv_ref[...], preferred_element_type=jnp.float32) + bkv_ref[...]

    # Per-head attention, statically unrolled; batch block folded into the einsum batch dim.
    ctx_parts = []
    for h in range(num_heads):
        lo = h * head_dim
        hi = lo + head_dim
        q_h = q[:, lo:hi].astype(_MXU_DTYPE).reshape(bb, q_len, head_dim)
        k_h = kv[:, lo:hi].astype(_MXU_DTYPE).reshape(bb, kv_len, head_dim)
        v_h = kv[:, E + lo:E + hi].astype(_MXU_DTYPE).reshape(bb, kv_len, head_dim)

        s = jnp.einsum("bqd,bkd->bqk", q_h, k_h, preferred_element_type=jnp.float32)
        m = jnp.max(s, axis=-1, keepdims=True)
        p = jnp.exp(s - m)
        denom = jnp.sum(p, axis=-1, keepdims=True)
        p = p * pl.reciprocal(denom, approx=True)
        ctx_h = jnp.einsum("bqk,bkd->bqd", p.astype(_MXU_DTYPE), v_h,
                           preferred_element_type=jnp.float32)
        ctx_parts.append(ctx_h.reshape(rows_q, head_dim).astype(_MXU_DTYPE))

    ctx = jnp.concatenate(ctx_parts, axis=-1)          # (rows_q, E) bf16

    # Single full-E output projection + gated epilogue (bias, tanh, FFN, tanh).
    attn = jnp.dot(ctx, wo_ref[...], preferred_element_type=jnp.float32) + bo_ref[...]
    a = jnp.tanh(attn)
    y = jnp.dot(a.astype(_MXU_DTYPE), wffn_ref[...],
                preferred_element_type=jnp.float32) + bffn_ref[...]
    o_ref[...] = jnp.tanh(y).astype(o_ref.dtype)


def _vmem_estimate_bytes(bb, q_len, kv_len, embed_dim, out_bytes):
    """Rough VMEM footprint of one grid step (double-buffered I/O + weights + temps)."""
    E = embed_dim
    rows_q = bb * q_len
    rows_k = bb * kv_len
    io = 2 * (rows_q * E + rows_k * E) * 2          # x / feature blocks (bf16), 2x buffered
    io += 2 * rows_q * E * out_bytes                # output block, 2x buffered
    w = 2 * (E * E + E * 2 * E + E * E + E * E) * 2  # wq|wkv|wo|wffn (bf16), 2x buffered
    b = 2 * (E + 2 * E + E + E) * 4                 # biases (f32)
    tmp = (rows_q * E + rows_k * 2 * E) * 4         # q / kv f32 temporaries
    tmp += bb * q_len * kv_len * 4 + rows_q * E * 4  # one head of scores + concatenated ctx
    return io + w + b + tmp


def _pick_batch_block(batch, q_len, kv_len, embed_dim, out_bytes,
                      budget_bytes, target_rows=512):
    """Largest VMEM-feasible divisor of `batch`, keeping >=2 (preferably >=4) parallel
    grid steps so both v7x TensorCores stay busy."""
    feasible = []
    for bb in range(1, batch + 1):
        if batch % bb:
            continue
        nb = batch // bb
        if batch >= 2 and nb < 2:
            continue
        if _vmem_estimate_bytes(bb, q_len, kv_len, embed_dim, out_bytes) > budget_bytes:
            continue
        feasible.append(bb)
    if not feasible:
        return 1
    # Prefer the smallest block that already fills the MXU rows while leaving >=4
    # (then >=2) parallel steps; otherwise take the largest feasible block.
    for min_nb in (4, 2):
        cands = [bb for bb in feasible
                 if bb * q_len >= target_rows and batch // bb >= min_nb]
        if cands:
            return min(cands)
    return max(feasible)


def gated_cross_attention_block(x, feature, params, num_heads):
    B, Lq, E = x.shape
    Bf, Lk, Ef = feature.shape
    assert Bf == B and Ef == E and E % num_heads == 0
    hd = E // num_heads
    scale = 1.0 / math.sqrt(hd)
    out_dtype = x.dtype
    out_bytes = jnp.dtype(out_dtype).itemsize

    # ---- host-side weight prep (plain XLA, outside the kernel) -------------------
    # (out, in) -> (in, out) so the kernel never transposes; fold the softmax scale
    # into the Q projection; fuse K|V into one (E, 2E) operand / (1, 2E) bias.
    wq_t = (params["wq"].T * scale).astype(_MXU_DTYPE)
    wkv_t = jnp.concatenate([params["wk"].T, params["wv"].T], axis=1).astype(_MXU_DTYPE)
    wo_t = params["wo"].T.astype(_MXU_DTYPE)
    wffn_t = params["wffn"].T.astype(_MXU_DTYPE)

    bq = (params["bq"] * scale).astype(jnp.float32).reshape(1, E)
    bkv = jnp.concatenate([params["bk"], params["bv"]],
                          axis=-1).astype(jnp.float32).reshape(1, 2 * E)
    bo = params["bo"].astype(jnp.float32).reshape(1, E)
    bffn = params["bffn"].astype(jnp.float32).reshape(1, E)

    # Fold (B, L) -> rows on the host (free, contiguous) so the kernel's projection
    # inputs are already 2-D and lane-dense.
    x2d = x.astype(_MXU_DTYPE).reshape(B * Lq, E)
    f2d = feature.astype(_MXU_DTYPE).reshape(B * Lk, E)

    # VMEM-budget-aware tiling; budget is conservative for v7x (64 MiB physical VMEM).
    budget = 40 * 2 ** 20
    Bb = _pick_batch_block(B, Lq, Lk, E, out_bytes, budget)
    nb = B // Bb
    est = _vmem_estimate_bytes(Bb, Lq, Lk, E, out_bytes)
    vmem_limit = int(min(48 * 2 ** 20, max(32 * 2 ** 20, int(est * 1.3))))

    rows_q = Bb * Lq
    rows_k = Bb * Lk

    kernel = functools.partial(_gated_xattn_kernel, num_heads=num_heads,
                               head_dim=hd, q_len=Lq, kv_len=Lk)

    grid_spec = pltpu.PrefetchScalarGridSpec(
        num_scalar_prefetch=0,
        grid=(nb,),
        in_specs=[
            pl.BlockSpec((rows_q, E), lambda b: (b, 0)),      # x rows
            pl.BlockSpec((rows_k, E), lambda b: (b, 0)),      # feature rows
            pl.BlockSpec((E, E), lambda b: (0, 0)),           # wq (scale folded)
            pl.BlockSpec((E, 2 * E), lambda b: (0, 0)),       # wk | wv fused
            pl.BlockSpec((E, E), lambda b: (0, 0)),           # wo
            pl.BlockSpec((E, E), lambda b: (0, 0)),           # wffn
            pl.BlockSpec((1, E), lambda b: (0, 0)),           # bq (scaled)
            pl.BlockSpec((1, 2 * E), lambda b: (0, 0)),       # bk | bv
            pl.BlockSpec((1, E), lambda b: (0, 0)),           # bo
            pl.BlockSpec((1, E), lambda b: (0, 0)),           # bffn
        ],
        out_specs=pl.BlockSpec((rows_q, E), lambda b: (b, 0)),
    )

    out2d = pl.pallas_call(
        kernel,
        out_shape=jax.ShapeDtypeStruct((B * Lq, E), out_dtype),
        grid_spec=grid_spec,
        compiler_params=pltpu.CompilerParams(
            dimension_semantics=("parallel",),
            vmem_limit_bytes=vmem_limit),
    )(x2d, f2d, wq_t, wkv_t, wo_t, wffn_t, bq, bkv, bo, bffn)

    return out2d.reshape(B, Lq, E)


def _reference(x, feature, params, num_heads):
    """Pure-JAX f32 reference matching nn.MultiheadAttention + tanh + Linear + tanh."""
    B, Lq, E = x.shape
    hd = E // num_heads
    q = x @ params["wq"].T + params["bq"]
    k = feature @ params["wk"].T + params["bk"]
    v = feature @ params["wv"].T + params["bv"]

    def split(t):
        Bv, L, _ = t.shape
        return t.reshape(Bv, L, num_heads, hd).transpose(0, 2, 1, 3)

    qh, kh, vh = split(q), split(k), split(v)
    scores = jnp.einsum("bhqd,bhkd->bhqk", qh, kh) / math.sqrt(hd)
    p = jax.nn.softmax(scores, axis=-1)
    attn = jnp.einsum("bhqk,bhkd->bhqd", p, vh)
    attn = attn.transpose(0, 2, 1, 3).reshape(B, Lq, E)
    attn = attn @ params["wo"].T + params["bo"]
    return jnp.tanh(jnp.tanh(attn) @ params["wffn"].T + params["bffn"])


def init_params(key, embed_dim):
    E = embed_dim
    ks = jax.random.split(key, 10)
    scale = 1.0 / math.sqrt(E)
    u = lambda k, shape: jax.random.uniform(k, shape, jnp.float32, -scale, scale)
    return {
        "wq": u(ks[0], (E, E)), "wk": u(ks[1], (E, E)), "wv": u(ks[2], (E, E)),
        "bq": u(ks[3], (1, E)), "bk": u(ks[4], (1, E)), "bv": u(ks[5], (1, E)),
        "wo": u(ks[6], (E, E)), "bo": u(ks[7], (1, E)),
        "wffn": u(ks[8], (E, E)), "bffn": u(ks[9], (1, E)),
    }


if __name__ == "__main__":
    B, Lq, Lk, E, H = 2, 8, 8, 32, 4

    key = jax.random.PRNGKey(0)
    kx, kf, kp = jax.random.split(key, 3)
    x = jax.random.normal(kx, (B, Lq, E), jnp.float32)
    feature = jax.random.normal(kf, (B, Lk, E), jnp.float32)
    params = init_params(kp, E)

    out = gated_cross_attention_block(x, feature, params, num_heads=H)
    out = jax.block_until_ready(out)

    ref = _reference(x, feature, params, num_heads=H)
    assert out.shape == (B, Lq, E)
    # bf16 MXU operands + approx reciprocal => relaxed tolerance vs f32 reference.
    assert jnp.allclose(out, ref, atol=5e-2, rtol=5e-2), "mismatch vs pure-JAX reference"

    print("KERNEL_OK")
</pallas_src>

<mosaic_0001>
module attributes {stable_mosaic.version = 11 : i64} {
  func.func @_gated_xattn_kernel(%arg0: i32, %arg1: memref<8x32xbf16, #tpu.memory_space<vmem>>, %arg2: memref<8x32xbf16, #tpu.memory_space<vmem>>, %arg3: memref<32x32xbf16, #tpu.memory_space<vmem>>, %arg4: memref<32x64xbf16, #tpu.memory_space<vmem>>, %arg5: memref<32x32xbf16, #tpu.memory_space<vmem>>, %arg6: memref<32x32xbf16, #tpu.memory_space<vmem>>, %arg7: memref<1x32xf32, #tpu.memory_space<vmem>>, %arg8: memref<1x64xf32, #tpu.memory_space<vmem>>, %arg9: memref<1x32xf32, #tpu.memory_space<vmem>>, %arg10: memref<1x32xf32, #tpu.memory_space<vmem>>, %arg11: memref<8x32xf32, #tpu.memory_space<vmem>>) attributes {dimension_semantics = [#tpu.dimension_semantics<parallel>], iteration_bounds = array<i64: 2>, scalar_prefetch = 0 : i64, scratch_operands = 0 : i64, tpu.core_type = #tpu.core_type<tc>, window_params = [{transform_indices = @transform_0, window_bounds = array<i64: 8, 32>}, {transform_indices = @transform_1, window_bounds = array<i64: 8, 32>}, {pipeline_mode = #tpu.pipeline_mode<synchronous>, transform_indices = @transform_2, window_bounds = array<i64: 32, 32>}, {pipeline_mode = #tpu.pipeline_mode<synchronous>, transform_indices = @transform_3, window_bounds = array<i64: 32, 64>}, {pipeline_mode = #tpu.pipeline_mode<synchronous>, transform_indices = @transform_4, window_bounds = array<i64: 32, 32>}, {pipeline_mode = #tpu.pipeline_mode<synchronous>, transform_indices = @transform_5, window_bounds = array<i64: 32, 32>}, {pipeline_mode = #tpu.pipeline_mode<synchronous>, transform_indices = @transform_6, window_bounds = array<i64: 1, 32>}, {pipeline_mode = #tpu.pipeline_mode<synchronous>, transform_indices = @transform_7, window_bounds = array<i64: 1, 64>}, {pipeline_mode = #tpu.pipeline_mode<synchronous>, transform_indices = @transform_8, window_bounds = array<i64: 1, 32>}, {pipeline_mode = #tpu.pipeline_mode<synchronous>, transform_indices = @transform_9, window_bounds = array<i64: 1, 32>}, {transform_indices = @transform_10, window_bounds = array<i64: 8, 32>}]} {
    %c0 = arith.constant 0 : index
    %c0_0 = arith.constant 0 : index
    %0 = vector.load %arg1[%c0, %c0_0] : memref<8x32xbf16, #tpu.memory_space<vmem>>, vector<8x32xbf16>
    %c0_1 = arith.constant 0 : index
    %c0_2 = arith.constant 0 : index
    %1 = vector.load %arg2[%c0_1, %c0_2] : memref<8x32xbf16, #tpu.memory_space<vmem>>, vector<8x32xbf16>
    %c0_3 = arith.constant 0 : index
    %c0_4 = arith.constant 0 : index
    %2 = vector.load %arg3[%c0_3, %c0_4] : memref<32x32xbf16, #tpu.memory_space<vmem>>, vector<32x32xbf16>
    %cst = arith.constant dense<0.000000e+00> : vector<8x32xf32>
    %3 = tpu.matmul %0, %2, %cst {dimension_numbers = #tpu.dot_dimension_numbers<[1], [0], [0], [1], [0, 0, 1, 1], [], []>} : vector<8x32xbf16>, vector<32x32xbf16>, vector<8x32xf32> -> vector<8x32xf32>
    %c0_5 = arith.constant 0 : index
    %c0_6 = arith.constant 0 : index
    %4 = vector.load %arg7[%c0_5, %c0_6] : memref<1x32xf32, #tpu.memory_space<vmem>>, vector<1x32xf32>
    %5 = vector.broadcast %4 : vector<1x32xf32> to vector<8x32xf32>
    %6 = arith.addf %3, %5 : vector<8x32xf32>
    %c0_7 = arith.constant 0 : index
    %c0_8 = arith.constant 0 : index
    %7 = vector.load %arg4[%c0_7, %c0_8] : memref<32x64xbf16, #tpu.memory_space<vmem>>, vector<32x64xbf16>
    %cst_9 = arith.constant dense<0.000000e+00> : vector<8x64xf32>
    %8 = tpu.matmul %1, %7, %cst_9 {dimension_numbers = #tpu.dot_dimension_numbers<[1], [0], [0], [1], [0, 0, 1, 1], [], []>} : vector<8x32xbf16>, vector<32x64xbf16>, vector<8x64xf32> -> vector<8x64xf32>
    %c0_10 = arith.constant 0 : index
    %c0_11 = arith.constant 0 : index
    %9 = vector.load %arg8[%c0_10, %c0_11] : memref<1x64xf32, #tpu.memory_space<vmem>>, vector<1x64xf32>
    %10 = vector.broadcast %9 : vector<1x64xf32> to vector<8x64xf32>
    %11 = arith.addf %8, %10 : vector<8x64xf32>
    %12 = vector.extract_strided_slice %6 {offsets = [0, 0], sizes = [8, 8], strides = [1, 1]} : vector<8x32xf32> to vector<8x8xf32>
    %13 = arith.truncf %12 : vector<8x8xf32> to vector<8x8xbf16>
    %14 = vector.shape_cast %13 : vector<8x8xbf16> to vector<1x8x8xbf16>
    %15 = vector.extract_strided_slice %11 {offsets = [0, 0], sizes = [8, 8], strides = [1, 1]} : vector<8x64xf32> to vector<8x8xf32>
    %16 = arith.truncf %15 : vector<8x8xf32> to vector<8x8xbf16>
    %17 = vector.shape_cast %16 : vector<8x8xbf16> to vector<1x8x8xbf16>
    %18 = vector.extract_strided_slice %11 {offsets = [0, 32], sizes = [8, 8], strides = [1, 1]} : vector<8x64xf32> to vector<8x8xf32>
    %19 = arith.truncf %18 : vector<8x8xf32> to vector<8x8xbf16>
    %20 = vector.shape_cast %19 : vector<8x8xbf16> to vector<1x8x8xbf16>
    "tpu.trace_start"() <{level = 10 : i32, message = "bqd,bkd->bqk"}> : () -> ()
    %cst_12 = arith.constant dense<0.000000e+00> : vector<1x8x8xf32>
    %21 = tpu.matmul %14, %17, %cst_12 {dimension_numbers = #tpu.dot_dimension_numbers<[2], [2], [1], [1], [0, 0, 0, 1, 1, 1], [0], [0]>} : vector<1x8x8xbf16>, vector<1x8x8xbf16>, vector<1x8x8xf32> -> vector<1x8x8xf32>
    "tpu.trace_stop"() : () -> ()
    %cst_13 = arith.constant dense<0xFF800000> : vector<1x8xf32>
    %22 = vector.multi_reduction <maximumf>, %21, %cst_13 [2] : vector<1x8x8xf32> to vector<1x8xf32>
    %23 = vector.shape_cast %22 : vector<1x8xf32> to vector<1x8x1xf32>
    %24 = vector.broadcast %23 : vector<1x8x1xf32> to vector<1x8x8xf32>
    %25 = arith.subf %21, %24 : vector<1x8x8xf32>
    %26 = math.exp %25 : vector<1x8x8xf32>
    %cst_14 = arith.constant dense<0.000000e+00> : vector<1x8xf32>
    %27 = vector.multi_reduction <add>, %26, %cst_14 [2] : vector<1x8x8xf32> to vector<1x8xf32>
    %28 = vector.shape_cast %27 : vector<1x8xf32> to vector<1x8x1xf32>
    %29 = tpu.reciprocal %28 {approx = true} : vector<1x8x1xf32> -> vector<1x8x1xf32>
    %30 = vector.broadcast %29 : vector<1x8x1xf32> to vector<1x8x8xf32>
    %31 = arith.mulf %26, %30 : vector<1x8x8xf32>
    %32 = arith.truncf %31 : vector<1x8x8xf32> to vector<1x8x8xbf16>
    "tpu.trace_start"() <{level = 10 : i32, message = "bqk,bkd->bqd"}> : () -> ()
    %cst_15 = arith.constant dense<0.000000e+00> : vector<1x8x8xf32>
    %33 = tpu.matmul %32, %20, %cst_15 {dimension_numbers = #tpu.dot_dimension_numbers<[2], [1], [1], [2], [0, 0, 0, 1, 1, 2], [0], [0]>} : vector<1x8x8xbf16>, vector<1x8x8xbf16>, vector<1x8x8xf32> -> vector<1x8x8xf32>
    "tpu.trace_stop"() : () -> ()
    %34 = vector.shape_cast %33 : vector<1x8x8xf32> to vector<8x8xf32>
    %35 = arith.truncf %34 : vector<8x8xf32> to vector<8x8xbf16>
    %36 = vector.extract_strided_slice %6 {offsets = [0, 8], sizes = [8, 8], strides = [1, 1]} : vector<8x32xf32> to vector<8x8xf32>
    %37 = arith.truncf %36 : vector<8x8xf32> to vector<8x8xbf16>
    %38 = vector.shape_cast %37 : vector<8x8xbf16> to vector<1x8x8xbf16>
    %39 = vector.extract_strided_slice %11 {offsets = [0, 8], sizes = [8, 8], strides = [1, 1]} : vector<8x64xf32> to vector<8x8xf32>
    %40 = arith.truncf %39 : vector<8x8xf32> to vector<8x8xbf16>
    %41 = vector.shape_cast %40 : vector<8x8xbf16> to vector<1x8x8xbf16>
    %42 = vector.extract_strided_slice %11 {offsets = [0, 40], sizes = [8, 8], strides = [1, 1]} : vector<8x64xf32> to vector<8x8xf32>
    %43 = arith.truncf %42 : vector<8x8xf32> to vector<8x8xbf16>
    %44 = vector.shape_cast %43 : vector<8x8xbf16> to vector<1x8x8xbf16>
    "tpu.trace_start"() <{level = 10 : i32, message = "bqd,bkd->bqk"}> : () -> ()
    %cst_16 = arith.constant dense<0.000000e+00> : vector<1x8x8xf32>
    %45 = tpu.matmul %38, %41, %cst_16 {dimension_numbers = #tpu.dot_dimension_numbers<[2], [2], [1], [1], [0, 0, 0, 1, 1, 1], [0], [0]>} : vector<1x8x8xbf16>, vector<1x8x8xbf16>, vector<1x8x8xf32> -> vector<1x8x8xf32>
    "tpu.trace_stop"() : () -> ()
    %cst_17 = arith.constant dense<0xFF800000> : vector<1x8xf32>
    %46 = vector.multi_reduction <maximumf>, %45, %cst_17 [2] : vector<1x8x8xf32> to vector<1x8xf32>
    %47 = vector.shape_cast %46 : vector<1x8xf32> to vector<1x8x1xf32>
    %48 = vector.broadcast %47 : vector<1x8x1xf32> to vector<1x8x8xf32>
    %49 = arith.subf %45, %48 : vector<1x8x8xf32>
    %50 = math.exp %49 : vector<1x8x8xf32>
    %cst_18 = arith.constant dense<0.000000e+00> : vector<1x8xf32>
    %51 = vector.multi_reduction <add>, %50, %cst_18 [2] : vector<1x8x8xf32> to vector<1x8xf32>
    %52 = vector.shape_cast %51 : vector<1x8xf32> to vector<1x8x1xf32>
    %53 = tpu.reciprocal %52 {approx = true} : vector<1x8x1xf32> -> vector<1x8x1xf32>
    %54 = vector.broadcast %53 : vector<1x8x1xf32> to vector<1x8x8xf32>
    %55 = arith.mulf %50, %54 : vector<1x8x8xf32>
    %56 = arith.truncf %55 : vector<1x8x8xf32> to vector<1x8x8xbf16>
    "tpu.trace_start"() <{level = 10 : i32, message = "bqk,bkd->bqd"}> : () -> ()
    %cst_19 = arith.constant dense<0.000000e+00> : vector<1x8x8xf32>
    %57 = tpu.matmul %56, %44, %cst_19 {dimension_numbers = #tpu.dot_dimension_numbers<[2], [1], [1], [2], [0, 0, 0, 1, 1, 2], [0], [0]>} : vector<1x8x8xbf16>, vector<1x8x8xbf16>, vector<1x8x8xf32> -> vector<1x8x8xf32>
    "tpu.trace_stop"() : () -> ()
    %58 = vector.shape_cast %57 : vector<1x8x8xf32> to vector<8x8xf32>
    %59 = arith.truncf %58 : vector<8x8xf32> to vector<8x8xbf16>
    %60 = vector.extract_strided_slice %6 {offsets = [0, 16], sizes = [8, 8], strides = [1, 1]} : vector<8x32xf32> to vector<8x8xf32>
    %61 = arith.truncf %60 : vector<8x8xf32> to vector<8x8xbf16>
    %62 = vector.shape_cast %61 : vector<8x8xbf16> to vector<1x8x8xbf16>
    %63 = vector.extract_strided_slice %11 {offsets = [0, 16], sizes = [8, 8], strides = [1, 1]} : vector<8x64xf32> to vector<8x8xf32>
    %64 = arith.truncf %63 : vector<8x8xf32> to vector<8x8xbf16>
    %65 = vector.shape_cast %64 : vector<8x8xbf16> to vector<1x8x8xbf16>
    %66 = vector.extract_strided_slice %11 {offsets = [0, 48], sizes = [8, 8], strides = [1, 1]} : vector<8x64xf32> to vector<8x8xf32>
    %67 = arith.truncf %66 : vector<8x8xf32> to vector<8x8xbf16>
    %68 = vector.shape_cast %67 : vector<8x8xbf16> to vector<1x8x8xbf16>
    "tpu.trace_start"() <{level = 10 : i32, message = "bqd,bkd->bqk"}> : () -> ()
    %cst_20 = arith.constant dense<0.000000e+00> : vector<1x8x8xf32>
    %69 = tpu.matmul %62, %65, %cst_20 {dimension_numbers = #tpu.dot_dimension_numbers<[2], [2], [1], [1], [0, 0, 0, 1, 1, 1], [0], [0]>} : vector<1x8x8xbf16>, vector<1x8x8xbf16>, vector<1x8x8xf32> -> vector<1x8x8xf32>
    "tpu.trace_stop"() : () -> ()
    %cst_21 = arith.constant dense<0xFF800000> : vector<1x8xf32>
    %70 = vector.multi_reduction <maximumf>, %69, %cst_21 [2] : vector<1x8x8xf32> to vector<1x8xf32>
    %71 = vector.shape_cast %70 : vector<1x8xf32> to vector<1x8x1xf32>
    %72 = vector.broadcast %71 : vector<1x8x1xf32> to vector<1x8x8xf32>
    %73 = arith.subf %69, %72 : vector<1x8x8xf32>
    %74 = math.exp %73 : vector<1x8x8xf32>
    %cst_22 = arith.constant dense<0.000000e+00> : vector<1x8xf32>
    %75 = vector.multi_reduction <add>, %74, %cst_22 [2] : vector<1x8x8xf32> to vector<1x8xf32>
    %76 = vector.shape_cast %75 : vector<1x8xf32> to vector<1x8x1xf32>
    %77 = tpu.reciprocal %76 {approx = true} : vector<1x8x1xf32> -> vector<1x8x1xf32>
    %78 = vector.broadcast %77 : vector<1x8x1xf32> to vector<1x8x8xf32>
    %79 = arith.mulf %74, %78 : vector<1x8x8xf32>
    %80 = arith.truncf %79 : vector<1x8x8xf32> to vector<1x8x8xbf16>
    "tpu.trace_start"() <{level = 10 : i32, message = "bqk,bkd->bqd"}> : () -> ()
    %cst_23 = arith.constant dense<0.000000e+00> : vector<1x8x8xf32>
    %81 = tpu.matmul %80, %68, %cst_23 {dimension_numbers = #tpu.dot_dimension_numbers<[2], [1], [1], [2], [0, 0, 0, 1, 1, 2], [0], [0]>} : vector<1x8x8xbf16>, vector<1x8x8xbf16>, vector<1x8x8xf32> -> vector<1x8x8xf32>
    "tpu.trace_stop"() : () -> ()
    %82 = vector.shape_cast %81 : vector<1x8x8xf32> to vector<8x8xf32>
    %83 = arith.truncf %82 : vector<8x8xf32> to vector<8x8xbf16>
    %84 = vector.extract_strided_slice %6 {offsets = [0, 24], sizes = [8, 8], strides = [1, 1]} : vector<8x32xf32> to vector<8x8xf32>
    %85 = arith.truncf %84 : vector<8x8xf32> to vector<8x8xbf16>
    %86 = vector.shape_cast %85 : vector<8x8xbf16> to vector<1x8x8xbf16>
    %87 = vector.extract_strided_slice %11 {offsets = [0, 24], sizes = [8, 8], strides = [1, 1]} : vector<8x64xf32> to vector<8x8xf32>
    %88 = arith.truncf %87 : vector<8x8xf32> to vector<8x8xbf16>
    %89 = vector.shape_cast %88 : vector<8x8xbf16> to vector<1x8x8xbf16>
    %90 = vector.extract_strided_slice %11 {offsets = [0, 56], sizes = [8, 8], strides = [1, 1]} : vector<8x64xf32> to vector<8x8xf32>
    %91 = arith.truncf %90 : vector<8x8xf32> to vector<8x8xbf16>
    %92 = vector.shape_cast %91 : vector<8x8xbf16> to vector<1x8x8xbf16>
    "tpu.trace_start"() <{level = 10 : i32, message = "bqd,bkd->bqk"}> : () -> ()
    %cst_24 = arith.constant dense<0.000000e+00> : vector<1x8x8xf32>
    %93 = tpu.matmul %86, %89, %cst_24 {dimension_numbers = #tpu.dot_dimension_numbers<[2], [2], [1], [1], [0, 0, 0, 1, 1, 1], [0], [0]>} : vector<1x8x8xbf16>, vector<1x8x8xbf16>, vector<1x8x8xf32> -> vector<1x8x8xf32>
    "tpu.trace_stop"() : () -> ()
    %cst_25 = arith.constant dense<0xFF800000> : vector<1x8xf32>
    %94 = vector.multi_reduction <maximumf>, %93, %cst_25 [2] : vector<1x8x8xf32> to vector<1x8xf32>
    %95 = vector.shape_cast %94 : vector<1x8xf32> to vector<1x8x1xf32>
    %96 = vector.broadcast %95 : vector<1x8x1xf32> to vector<1x8x8xf32>
    %97 = arith.subf %93, %96 : vector<1x8x8xf32>
    %98 = math.exp %97 : vector<1x8x8xf32>
    %cst_26 = arith.constant dense<0.000000e+00> : vector<1x8xf32>
    %99 = vector.multi_reduction <add>, %98, %cst_26 [2] : vector<1x8x8xf32> to vector<1x8xf32>
    %100 = vector.shape_cast %99 : vector<1x8xf32> to vector<1x8x1xf32>
    %101 = tpu.reciprocal %100 {approx = true} : vector<1x8x1xf32> -> vector<1x8x1xf32>
    %102 = vector.broadcast %101 : vector<1x8x1xf32> to vector<1x8x8xf32>
    %103 = arith.mulf %98, %102 : vector<1x8x8xf32>
    %104 = arith.truncf %103 : vector<1x8x8xf32> to vector<1x8x8xbf16>
    "tpu.trace_start"() <{level = 10 : i32, message = "bqk,bkd->bqd"}> : () -> ()
    %cst_27 = arith.constant dense<0.000000e+00> : vector<1x8x8xf32>
    %105 = tpu.matmul %104, %92, %cst_27 {dimension_numbers = #tpu.dot_dimension_numbers<[2], [1], [1], [2], [0, 0, 0, 1, 1, 2], [0], [0]>} : vector<1x8x8xbf16>, vector<1x8x8xbf16>, vector<1x8x8xf32> -> vector<1x8x8xf32>
    "tpu.trace_stop"() : () -> ()
    %106 = vector.shape_cast %105 : vector<1x8x8xf32> to vector<8x8xf32>
    %107 = arith.truncf %106 : vector<8x8xf32> to vector<8x8xbf16>
    %108 = tpu.concatenate %35, %59, %83, %107 in 1 : vector<8x8xbf16>, vector<8x8xbf16>, vector<8x8xbf16>, vector<8x8xbf16> -> vector<8x32xbf16>
    %c0_28 = arith.constant 0 : index
    %c0_29 = arith.constant 0 : index
    %109 = vector.load %arg5[%c0_28, %c0_29] : memref<32x32xbf16, #tpu.memory_space<vmem>>, vector<32x32xbf16>
    %cst_30 = arith.constant dense<0.000000e+00> : vector<8x32xf32>
    %110 = tpu.matmul %108, %109, %cst_30 {dimension_numbers = #tpu.dot_dimension_numbers<[1], [0], [0], [1], [0, 0, 1, 1], [], []>} : vector<8x32xbf16>, vector<32x32xbf16>, vector<8x32xf32> -> vector<8x32xf32>
    %c0_31 = arith.constant 0 : index
    %c0_32 = arith.constant 0 : index
    %111 = vector.load %arg9[%c0_31, %c0_32] : memref<1x32xf32, #tpu.memory_space<vmem>>, vector<1x32xf32>
    %112 = vector.broadcast %111 : vector<1x32xf32> to vector<8x32xf32>
    %113 = arith.addf %110, %112 : vector<8x32xf32>
    %114 = math.tanh %113 : vector<8x32xf32>
    %115 = arith.truncf %114 : vector<8x32xf32> to vector<8x32xbf16>
    %c0_33 = arith.constant 0 : index
    %c0_34 = arith.constant 0 : index
    %116 = vector.load %arg6[%c0_33, %c0_34] : memref<32x32xbf16, #tpu.memory_space<vmem>>, vector<32x32xbf16>
    %cst_35 = arith.constant dense<0.000000e+00> : vector<8x32xf32>
    %117 = tpu.matmul %115, %116, %cst_35 {dimension_numbers = #tpu.dot_dimension_numbers<[1], [0], [0], [1], [0, 0, 1, 1], [], []>} : vector<8x32xbf16>, vector<32x32xbf16>, vector<8x32xf32> -> vector<8x32xf32>
    %c0_36 = arith.constant 0 : index
    %c0_37 = arith.constant 0 : index
    %118 = vector.load %arg10[%c0_36, %c0_37] : memref<1x32xf32, #tpu.memory_space<vmem>>, vector<1x32xf32>
    %119 = vector.broadcast %118 : vector<1x32xf32> to vector<8x32xf32>
    %120 = arith.addf %117, %119 : vector<8x32xf32>
    %121 = math.tanh %120 : vector<8x32xf32>
    %c0_38 = arith.constant 0 : index
    %c0_39 = arith.constant 0 : index
    %122 = vector.load %arg11[%c0_38, %c0_39] : memref<8x32xf32, #tpu.memory_space<vmem>>, vector<8x32xf32>
    tpu.vector_store %arg11[%c0_38, %c0_39], %121 {strides = array<i32>} : memref<8x32xf32, #tpu.memory_space<vmem>>, vector<8x32xf32>,
    return
  }
  func.func @transform_0(%arg0: i32) -> (i32, i32) {
    %c0_i32 = arith.constant 0 : i32
    %c0_i32_0 = arith.constant 0 : i32
    return %arg0, %c0_i32 : i32, i32
  }
  func.func @transform_1(%arg0: i32) -> (i32, i32) {
    %c0_i32 = arith.constant 0 : i32
    %c0_i32_0 = arith.constant 0 : i32
    return %arg0, %c0_i32 : i32, i32
  }
  func.func @transform_2(%arg0: i32) -> (i32, i32) {
    %c0_i32 = arith.constant 0 : i32
    %c0_i32_0 = arith.constant 0 : i32
    %c0_i32_1 = arith.constant 0 : i32
    return %c0_i32, %c0_i32_0 : i32, i32
  }
  func.func @transform_3(%arg0: i32) -> (i32, i32) {
    %c0_i32 = arith.constant 0 : i32
    %c0_i32_0 = arith.constant 0 : i32
    %c0_i32_1 = arith.constant 0 : i32
    return %c0_i32, %c0_i32_0 : i32, i32
  }
  func.func @transform_4(%arg0: i32) -> (i32, i32) {
    %c0_i32 = arith.constant 0 : i32
    %c0_i32_0 = arith.constant 0 : i32
    %c0_i32_1 = arith.constant 0 : i32
    return %c0_i32, %c0_i32_0 : i32, i32
  }
  func.func @transform_5(%arg0: i32) -> (i32, i32) {
    %c0_i32 = arith.constant 0 : i32
    %c0_i32_0 = arith.constant 0 : i32
    %c0_i32_1 = arith.constant 0 : i32
    return %c0_i32, %c0_i32_0 : i32, i32
  }
  func.func @transform_6(%arg0: i32) -> (i32, i32) {
    %c0_i32 = arith.constant 0 : i32
    %c0_i32_0 = arith.constant 0 : i32
    %c0_i32_1 = arith.constant 0 : i32
    return %c0_i32, %c0_i32_0 : i32, i32
  }
  func.func @transform_7(%arg0: i32) -> (i32, i32) {
    %c0_i32 = arith.constant 0 : i32
    %c0_i32_0 = arith.constant 0 : i32
    %c0_i32_1 = arith.constant 0 : i32
    return %c0_i32, %c0_i32_0 : i32, i32
  }
  func.func @transform_8(%arg0: i32) -> (i32, i32) {
    %c0_i32 = arith.constant 0 : i32
    %c0_i32_0 = arith.constant 0 : i32
    %c0_i32_1 = arith.constant 0 : i32
    return %c0_i32, %c0_i32_0 : i32, i32
  }
  func.func @transform_9(%arg0: i32) -> (i32, i32) {
    %c0_i32 = arith.constant 0 : i32
    %c0_i32_0 = arith.constant 0 : i32
    %c0_i32_1 = arith.constant 0 : i32
    return %c0_i32, %c0_i32_0 : i32, i32
  }
  func.func @transform_10(%arg0: i32) -> (i32, i32) {
    %c0_i32 = arith.constant 0 : i32
    %c0_i32_0 = arith.constant 0 : i32
    return %arg0, %c0_i32 : i32, i32
  }
}

</mosaic_0001>

<bundles_post_ra>
// kernel: tpu_custom_call.1
= control target key start
LH: loop header
LB: loop body
LE: loop exit
PB: predicated region body
PF: predicated region fallthrough
CT: control target
= control target key end

     0   :  { %s2297_s0 = inlined_call_operand.hbm [shape: bf16[16,32], index: 0, kind: input, shape index: {}]   ;;  %s2298_s1 = inlined_call_operand.hbm [shape: bf16[16,32], index: 1, kind: input, shape index: {}]   ;;  %s2299_s2 = inlined_call_operand.hbm [shape: bf16[32,32], index: 2, kind: input, shape index: {}]   ;;  %s2300_s3 = inlined_call_operand.hbm [shape: bf16[32,64], index: 3, kind: input, shape index: {}]   ;;  %s2301_s4 = inlined_call_operand.hbm [shape: bf16[32,32], index: 4, kind: input, shape index: {}]   ;;  %s2302_s5 = inlined_call_operand.vmem [shape: bf16[32,32], index: 5, kind: input, shape index: {}]   ;;  %s2303_s6 = inlined_call_operand.vmem [shape: f32[1,32], index: 6, kind: input, shape index: {}]   ;;  %s2304_s7 = inlined_call_operand.vmem [shape: f32[1,64], index: 7, kind: input, shape index: {}]   ;;  %s2305_s8 = inlined_call_operand.vmem [shape: f32[1,32], index: 8, kind: input, shape index: {}]   ;;  %s2306_s9 = inlined_call_operand.vmem [shape: f32[1,32], index: 9, kind: input, shape index: {}]   ;;  %s2307_s10 = inlined_call_operand.hbm [shape: f32[16,32], index: 10, kind: output, shape index: {}]  }
   0x1   :  { %2315 = sst [smem:[#allocation19_spill]] %s2299_s2 }
   0x2   :  { %2316 = sst [smem:[#allocation20_spill]] %s2300_s3 }
   0x3   :  { %2317 = sst [smem:[#allocation21_spill]] %s2301_s4 }
   0x4   :  { %2318 = sst [smem:[#allocation22_spill]] %s2306_s9 }
   0x5   :  { %2319 = sst [smem:[#allocation23_spill]] %s2307_s10 }
   0x6   :  { %15 = vsyncpa [#allocation3], 0 }
   0x7   :  { %17 = vsyncpa [#allocation3 + $0x1], 0 }
   0x8   :  { %18 = vsyncpa [#allocation6], 0 }
   0x9   :  { %20 = vsyncpa [#allocation6 + $0x1], 0 }
   0xa   :  { %21 = vsyncpa [#allocation9], 0 }
   0xb   :  { %22 = vsyncpa [#allocation4], 0 }
   0xc   :  { %24 = vsyncpa [#allocation4 + $0x1], 0  ;;  %s1901_s13 = smov 0   ;;  %s1903_s14 = smov 0  }
   0xd   :  { %s1905_s15 = smov 0   ;;  %s1907_s16 = smov 0  }
   0xe LB: > { %2320 = sst [smem:[#allocation17_spill]] %s1812_s13  ;;  %s1922_s17 = sadd.s32 4294967295, %s1824_s16   ;;  %s1824_s16 = sphi %s1907_s16, %s2350_s16   ;;  %s1820_s15 = sphi %s1905_s15, %s2349_s15   ;;  %s1816_s14 = sphi %s1903_s14, %s2348_s14   ;;  %s1812_s13 = sphi %s1901_s13, %s2347_s13  }
   0xf   : > { %s1325_s18 = sadd.s32 4294967294, %s1824_s16   ;;  %p50_p0 = scmp.ne.s32.totalorder %s1816_s14, %s1812_s13 }
  0x10   : > { %p2308_p1 = scmp.eq.s32.totalorder %s1922_s17, 0  ;;  %p274_p3 = scmp.eq.s32.totalorder %s1325_s18, 1 }
  0x11   : > { %p1326_p5 = scmp.ge.s32.totalorder %s1824_s16, 1  ;;  %p281_p7 = scmp.lt.s32.totalorder %s1824_s16, 3 }
  0x12   : > { %p1931_p4 = por %p2308_p1, %p50_p0  ;;  %p1936_p6 = por %p274_p3, %p50_p0 }
  0x13   : > { %p1941_p8 = pnand %p1326_p5, %p281_p7  ;;  %s1826_s22 = smov [#allocation7]  }
  0x14   : > { %s2321_s19 = scalar_select %p1931_p4, 1, 0 }
  0x15   : > { %s2322_s20 = scalar_select %p1936_p6, 1, 0 }
  0x16   : > { %s2324_s21 = scalar_select %p1941_p8, 1, 0 }
  0x17   : > { %2323 = sst [smem:[#allocation18_spill]] %s2322_s20  ;;  %s293_s23 = sshll.u32 %s1826_s22, 4  ;;  %s1945_s23 = int_to_ptr.vmem [resolvable:$true] %s293_s23 }
  0x18   : > { %p1496_p9 = pneg %p1941_p8  ;;  %s1827_s25 = smov [#allocation8]  }
  0x19   : > { %s306_s26 = sshll.u32 %s1827_s25, 4  ;;  %s1828_s27 = smov [#allocation10]   ;;  %s1956_s26 = int_to_ptr.vmem [resolvable:$true] %s306_s26 }
  0x1a   : > { %p1952_p11 = pnand %p1496_p9, %p2308_p1  ;;  %s1958_s28 = sshll.u32 %s1828_s27, 4  ;;  %s320_s28 = int_to_ptr.vmem [resolvable:$true] %s1958_s28 }
  0x1b   : > { %s2326_s2 = sld [smem:[#allocation19_spill]] }
  0x1c   : > { %p1968_p13 = pneg %p1952_p11 }
  0x21   : > { %s1602_s11 = scalar_lea.hbm %s2326_s2, 256 }
  0x22   : > { %p1603_p12 = scmp.ne.s32.totalorder %s2326_s2, %s1602_s11  ;;  %p1609_p5 = scmp.lt.u32.totalorder %s1602_s11, %s2326_s2 }
  0x24   : > { %p1605_p0 = pnand %p1968_p13, %p1603_p12 }
  0x26   : > { %p1606_p3 = pneg %p1605_p0 }
  0x28   : > { %p1611_p7 = pnand %p1609_p5, %p1606_p3 }
  0x2a   : > { %1614 = shalt.err (!%p1611_p7)
}
  0x2b   : > { %s1615_s29 = scalar_lea.vmem %s1945_s23, 256  ;;  %p1623_p2 = scmp.lt.s32.totalorder %s1945_s23, %s1945_s23 }
  0x2c   : > { %p1616_p9 = scmp.ne.s32.totalorder %s1945_s23, %s1615_s29  ;;  %p1624_p6 = scmp.lt.s32.totalorder %s1615_s29, %s1615_s29 }
  0x2e   : > { %p1618_p10 = pnand %p1616_p9, %p1968_p13  ;;  %p1625_p12 = por %p1624_p6, %p1623_p2 }
  0x30   : > { %p1619_p1 = pneg %p1618_p10 }
  0x32   : > { %p1626_p0 = pnand %p1625_p12, %p1619_p1 }
  0x34   : > { %1629 = shalt.err (!%p1626_p0)
}
  0x35   : > { %s1829_s30 = smov 64   ;;  %s1830_s11 = smov 4  }
  0x36   : > { %1499 = dma.hbm_to_vmem [thread:$0]  (!%p1952_p11), %s2326_s2, 256, %s1945_s23, [#allocation6], %s1829_s30, %s1829_s30, %s1830_s11  }
  0x37   : > { %s2328_s3 = sld [smem:[#allocation20_spill]] }
  0x3d   : > { %s1630_s29 = scalar_lea.hbm %s2328_s3, 256 }
  0x3e   : > { %p1631_p1 = scmp.ne.s32.totalorder %s2328_s3, %s1630_s29  ;;  %p1637_p10 = scmp.lt.u32.totalorder %s1630_s29, %s2328_s3 }
  0x40   : > { %p1633_p2 = pnand %p1631_p1, %p1968_p13 }
  0x42   : > { %p1634_p6 = pneg %p1633_p2 }
  0x44   : > { %p1639_p3 = pnand %p1637_p10, %p1634_p6 }
  0x46   : > { %1642 = shalt.err (!%p1639_p3)
}
  0x47   : > { %s1643_s23 = scalar_lea.vmem %s1956_s26, 256  ;;  %p1651_p12 = scmp.lt.s32.totalorder %s1956_s26, %s1956_s26 }
  0x48   : > { %p1644_p5 = scmp.ne.s32.totalorder %s1956_s26, %s1643_s23  ;;  %p1652_p0 = scmp.lt.s32.totalorder %s1643_s23, %s1643_s23 }
  0x4a   : > { %p1646_p7 = pnand %p1644_p5, %p1968_p13  ;;  %p1653_p1 = por %p1652_p0, %p1651_p12 }
  0x4c   : > { %p1647_p9 = pneg %p1646_p7 }
  0x4e   : > { %p1654_p2 = pnand %p1653_p1, %p1647_p9 }
  0x50   : > { %1657 = shalt.err (!%p1654_p2)
}
  0x51   : > { %1502 = dma.hbm_to_vmem [thread:$0]  (!%p1952_p11), %s2328_s3, 256, %s1956_s26, [#allocation9], %s1829_s30, %s1829_s30, %s1830_s11  }
  0x52   : > { %s2329_s4 = sld [smem:[#allocation21_spill]] }
  0x58   : > { %s1658_s12 = scalar_lea.hbm %s2329_s4, 256 }
  0x59   : > { %p1659_p6 = scmp.ne.s32.totalorder %s2329_s4, %s1658_s12  ;;  %p1665_p5 = scmp.lt.u32.totalorder %s1658_s12, %s2329_s4 }
  0x5b   : > { %p1661_p10 = pnand %p1659_p6, %p1968_p13 }
  0x5d   : > { %p1662_p3 = pneg %p1661_p10 }
  0x5f   : > { %p1667_p7 = pnand %p1665_p5, %p1662_p3 }
  0x61   : > { %1670 = shalt.err (!%p1667_p7)
}
  0x62   : > { %s1671_s23 = scalar_lea.vmem %s320_s28, 256  ;;  %p1679_p1 = scmp.lt.s32.totalorder %s320_s28, %s320_s28 }
  0x63   : > { %p1672_p9 = scmp.ne.s32.totalorder %s320_s28, %s1671_s23  ;;  %p1680_p2 = scmp.lt.s32.totalorder %s1671_s23, %s1671_s23 }
  0x65   : > { %p1674_p12 = pnand %p1672_p9, %p1968_p13  ;;  %p1681_p4 = por %p1680_p2, %p1679_p1 }
  0x67   : > { %p1675_p0 = pneg %p1674_p12 }
  0x69   : > { %p1682_p8 = pnand %p1681_p4, %p1675_p0 }
  0x6b   : > { %1685 = shalt.err (!%p1682_p8)
}
  0x6c   : > { %1505 = dma.hbm_to_vmem [thread:$0]  (!%p1952_p11), %s2329_s4, 256, %s320_s28, [#allocation9], %s1829_s30, %s1829_s30, %s1830_s11  }
  0x6d   : > { %s2041_s22 = sadd.s32 1, %s1824_s16   ;;  %s37_s10 = sadd.s32 1, %s1820_s15 }
  0x6e   : > { %s34_s24 = ssub.s32 %s1824_s16, %s2041_s22  ;;  %p44_p8 = scmp.ne.s32.totalorder %s1820_s15, %s1816_s14 }
  0x6f   : > { %p35_p4 = scmp.eq.s32.totalorder %s34_s24, 0  ;;  %p45_p13 = scmp.eq.s32.totalorder %s1824_s16, 0 }
  0x70   : > { %p1520_p6 = scmp.lt.s32.totalorder %s1824_s16, 2  ;;  %p2330_p3 = scmp.eq.s32.totalorder %s1922_s17, 1 }
  0x71   : > { %s2051_s13 = scalar_select %p35_p4, %s1820_s15, %s37_s10  }
  0x72   : > { %p46_p10 = por %p45_p13, %p44_p8  ;;  %p2055_p5 = por %p2330_p3, %p44_p8 }
  0x73   : > { %s348_s12 = sand.u32 1, %s1820_s15   ;;  %s1332_s18 = sshll.u32 %s1824_s16, 6 }
  0x74   : > { %s2331_s20 = scalar_select %p2055_p5, 1, 0 }
  0x75   : > { %s2061_s28 = sshll.u32 %s348_s12, 2  ;;  %s2066_s25 = scalar_lea.hbm %s2297_s0, %s1332_s18 }
  0x76   : > { %s352_s27 = scalar_lea.vmem [#allocation2], %s2061_s28  ;;  %p2069_p11 = pnand %p1520_p6, %p46_p10 }
  0x77   : > { %s359_s29 = sshll.u32 %s352_s27, 4  ;;  %s2078_s24 = scalar_lea.hbm %s2298_s1, %s1332_s18  ;;  %s2073_s29 = int_to_ptr.vmem [resolvable:$true] %s359_s29 }
  0x78   : > { %s349_s10 = scalar_lea.sflag [#allocation3], %s348_s12  ;;  %s1686_s30 = scalar_lea.hbm %s2066_s25, 64 }
  0x79   : > { %p1687_p7 = scmp.ne.s32.totalorder %s2066_s25, %s1686_s30  ;;  %p1688_p9 = pneg %p2069_p11 }
  0x7a   : > { %s1691_s2 = scalar_lea.hbm %s2297_s0, 128  ;;  %p1692_p1 = scmp.lt.u32.totalorder %s2066_s25, %s2297_s0 }
  0x7b   : > { %p1689_p12 = pnand %p1688_p9, %p1687_p7  ;;  %p1693_p2 = scmp.lt.u32.totalorder %s1691_s2, %s1686_s30 }
  0x7c   : > { %p1695_p8 = scmp.lt.u32.totalorder %s1686_s30, %s2066_s25 }
  0x7d   : > { %p1690_p0 = pneg %p1689_p12  ;;  %p1694_p4 = por %p1693_p2, %p1692_p1 }
  0x7f   : > { %p1696_p13 = por %p1695_p8, %p1694_p4 }
  0x81   : > { %p1697_p6 = pnand %p1696_p13, %p1690_p0 }
  0x83   : > { %1700 = shalt.err (!%p1697_p6)
}
  0x84   : > { %s1701_s12 = scalar_lea.vmem %s2073_s29, 64  ;;  %s1831_s18 = smov [#allocation2]  }
  0x85   : > { %p1702_p10 = scmp.ne.s32.totalorder %s2073_s29, %s1701_s12  ;;  %s1706_s26 = sshll.u32 %s1831_s18, 4  ;;  %s1707_s26 = int_to_ptr.vmem [resolvable:$false] %s1706_s26 }
  0x86   : > { %s1708_s3 = scalar_lea.vmem %s1707_s26, 128  ;;  %p1709_p12 = scmp.lt.s32.totalorder %s2073_s29, %s1707_s26 }
  0x87   : > { %p1704_p3 = pnand %p1702_p10, %p1688_p9  ;;  %p1710_p1 = scmp.lt.s32.totalorder %s1708_s3, %s1701_s12 }
  0x89   : > { %p1705_p7 = pneg %p1704_p3  ;;  %p1711_p2 = por %p1710_p1, %p1709_p12 }
  0x8b   : > { %p1712_p4 = pnand %p1711_p2, %p1705_p7 }
  0x8d   : > { %1715 = shalt.err (!%p1712_p4)
}
  0x8e   : > { %1509 = dma.hbm_to_vmem [thread:$0]  (!%p2069_p11), %s2066_s25, 64, %s2073_s29, %s349_s10  }
  0x8f   : > { %s366_s2 = sand.u32 1, %s1824_s16   ;;  %s370_s4 = scalar_lea.vmem [#allocation5], %s2061_s28 }
  0x90   : > { %s377_s9 = sshll.u32 %s370_s4, 4  ;;  %s367_s30 = scalar_lea.sflag [#allocation6], %s366_s2  ;;  %s378_s9 = int_to_ptr.vmem [resolvable:$true] %s377_s9 }
  0x91   : > { %s1716_s11 = scalar_lea.hbm %s2078_s24, 64  ;;  %s1721_s18 = scalar_lea.hbm %s2298_s1, 128 }
  0x92   : > { %p1717_p0 = scmp.ne.s32.totalorder %s2078_s24, %s1716_s11  ;;  %p1722_p6 = scmp.lt.u32.totalorder %s2078_s24, %s2298_s1 }
  0x93   : > { %p1723_p10 = scmp.lt.u32.totalorder %s1721_s18, %s1716_s11  ;;  %p1725_p7 = scmp.lt.u32.totalorder %s1716_s11, %s2078_s24 }
  0x94   : > { %p1719_p8 = pnand %p1717_p0, %p1688_p9 }
  0x95   : > { %p1724_p3 = por %p1723_p10, %p1722_p6 }
  0x96   : > { %p1720_p13 = pneg %p1719_p8 }
  0x97   : > { %p1726_p12 = por %p1725_p7, %p1724_p3 }
  0x99   : > { %p1727_p1 = pnand %p1726_p12, %p1720_p13 }
  0x9b   : > { %1730 = shalt.err (!%p1727_p1)
}
  0x9c   : > { %s1731_s28 = scalar_lea.vmem %s378_s9, 64  ;;  %s1832_s25 = smov [#allocation5]  }
  0x9d   : > { %p1732_p2 = scmp.ne.s32.totalorder %s378_s9, %s1731_s28  ;;  %s1736_s29 = sshll.u32 %s1832_s25, 4  ;;  %s1737_s29 = int_to_ptr.vmem [resolvable:$false] %s1736_s29 }
  0x9e   : > { %s1738_s10 = scalar_lea.vmem %s1737_s29, 128  ;;  %p1739_p8 = scmp.lt.s32.totalorder %s378_s9, %s1737_s29 }
  0x9f   : > { %p1734_p4 = pnand %p1732_p2, %p1688_p9  ;;  %p1740_p5 = scmp.lt.s32.totalorder %s1738_s10, %s1731_s28 }
  0xa1   : > { %p1735_p0 = pneg %p1734_p4  ;;  %p1741_p6 = por %p1740_p5, %p1739_p8 }
  0xa3   : > { %p1742_p10 = pnand %p1741_p6, %p1735_p0 }
  0xa5   : > { %1745 = shalt.err (!%p1742_p10)
}
  0xa6   : > { %1512 = dma.hbm_to_vmem [thread:$0]  (!%p2069_p11), %s2078_s24, 64, %s378_s9, %s367_s30  }
  0xa7   : > { %p2333_p13 = scmp.ne.s32.totalorder %s2324_s21, 0 }
  0xa8   : > { %s2129_s2 = sand.u32 (!%p2333_p13), 1, %s1816_s14   ;;  %p2334_p9 = scmp.ne.s32.totalorder (!%p2333_p13), %s2321_s19, 0 }
  0xa9   : > { %386 = sbr.rel (%p2333_p13) target bundleno = 1884 (0x75c), region = 60  ;;  %s1336_s4 = sshll.u32 (!%p2333_p13), %s2129_s2, 2 }
  0xaa   : > { %s389_s11 = scalar_lea.sflag (!%p2333_p13), [#allocation3], %s2129_s2  ;;  %s392_s27 = scalar_lea.vmem (!%p2333_p13), [#allocation2], %s1336_s4 }
  0xb0   : > { %1791 = dma.done.wait (%p2334_p9), %s389_s11, 64  }
  0xb1   : > { %1793 = vsyncadd (%p2334_p9), %s389_s11, 4294967232  ;;  %s397_s23 = sand.u32 1, %s1922_s17   ;;  %s401_s21 = scalar_lea.vmem [#allocation5], %s1336_s4 }
  0xb2   : > { %s398_s24 = scalar_lea.sflag [#allocation6], %s397_s23 }
  0xb3   : > { %1795 = dma.done.wait (%p2334_p9), %s398_s24, 64  }
  0xb4   : > { %1797 = vsyncadd (%p2334_p9), %s398_s24, 4294967232  ;;  %p2335_p5 = scmp.eq.s32.totalorder %s1922_s17, 0 }
  0xb6   : > { %1799 = dma.done.wait (%p2335_p5), [#allocation6], 256   ;;  %p2336_p11 = pmov %p2335_p5 }
  0xb7   : > { %p2337_p3 = pmov %p2335_p5 }
  0xb8   : > { %1801 = vsyncadd (%p2336_p11), [#allocation6], 4294967040 }
  0xb9   : > { %1803 = dma.done.wait (%p2337_p3), [#allocation9], 512   ;;  %p2338_p7 = pmov %p2337_p3 }
  0xba   : > { %v1833_v0 = vmov 0.0   ;;  %vm1834_vm0 = vmmov 0   ;;  %v1574_v1 = vld [vmem:[#allocation8] sm:$0xff]   ;;  %v1575_v2 = vld [vmem:[#allocation7] sm:$0xff]   ;;  %v1576_v3 = vld [vmem:[#allocation8 + $0x8] sm:$0xff]   ;;  %vm481_vm1 = vcmask 261120  }
  0xbb   : > { %1805 = vsyncadd (%p2338_p7), [#allocation9], 4294966784  ;;  %1406 = vmatprep.subr.bf16.mxu1 %v1833_v0  ;;  %1398 = vmatprep.subr.bf16.mxu0 %v1833_v0  ;;  %v457_v4 = vld [vmem:[%s401_s21] sm:$0xf]  ;;  %v1577_v5 = vld [vmem:[#allocation7 + $0x8] sm:$0xff]   ;;  %vm593_vm2 = vcmask 64512  }
  0xbc   : > { %1410 = vmatprep.mubr.msk.bf16.mxu1 %vm1834_vm0, %v1833_v0  ;;  %1402 = vmatprep.mubr.msk.bf16.mxu0 %vm1834_vm0, %v1833_v0  ;;  %v456_v6 = vld [vmem:[%s392_s27] sm:$0xf]  ;;  %v1346_v7 = vld [vmem:[%s2304_s7] ss:$0 sm:$0xff]  ;;  %s1835_s18 = smov 112   ;;  %s1836_s26 = smov 120  }
  0xbd   : > { %1407 = vmatpush3.bf16.msra.mxu1 %v1574_v1  ;;  %1399 = vmatpush3.bf16.msra.mxu0 %v1575_v2  ;;  %v1342_v8 = vld [vmem:[%s2303_s6] ss:$0 sm:$0xff]  ;;  %s1837_s3 = smov 104   ;;  %s1838_s28 = smov 96   ;;  %vm658_vm3 = vcmask 1043456   ;;  %vm1049_vm4 = vcmask 130048  }
  0xbe   : > { %1408 = vmatprep.subr.bf16.mxu1 %v1833_v0  ;;  %1400 = vmatprep.subr.bf16.mxu0 %v1833_v0  ;;  %s1839_s25 = smov 80   ;;  %s1840_s29 = smov 72   ;;  %vm1052_vm5 = vcmask 195584  }
  0xbf   : > { %s1841_s10 = smov 88   ;;  %s1842_s4 = smov 8  }
  0xc0   : > { %s1843_s11 = smov 16   ;;  %s1844_s27 = smov 24  }
  0xc1   : > { %1409 = vmatpush3.bf16.msra.mxu1 %v1576_v3  ;;  %1401 = vmatpush3.bf16.msra.mxu0 %v1577_v5  ;;  %s1191_s23 = scalar_lea.sflag [#allocation4], %s2129_s2  ;;  %p2341_p1 = scmp.ne.s32.totalorder %s2331_s20, 0 }
  0xc2   : > { %1420 = vmatprep.subr.bf16.mxu1 %v1833_v0  ;;  %1414 = vmatprep.subr.bf16.mxu0 %v1833_v0 }
  0xc4   : > { %1411 = vmatmul.mubr.msk.bf16.vlgmr.msra.gmra.mrb[0].mxu1 %vm481_vm1, %v457_v4  ;;  %1403 = vmatmul.mubr.msk.bf16.vlgmr.msra.gmra.mrb[0].mxu0 %vm481_vm1, %v456_v6 }
  0xc5   : > { %1422 = vmatprep.mubr.msk.bf16.mxu1 %vm1834_vm0, %v1833_v0  ;;  %1416 = vmatprep.mubr.msk.bf16.mxu0 %vm1834_vm0, %v1833_v0 }
 0x197   : > { %v585_v9 = vpop.f32.mrb[0].mxu1  ;;  %v519_v12 = vpop.f32.mrb[0].mxu0 }
 0x198   : > { %v586_v10 = vadd.f32 %v1346_v7, %v585_v9  ;;  %v1412_v11 = vpop.f32.mrb[1].mxu1  ;;  %v520_v14 = vadd.f32 %v1342_v8, %v519_v12  ;;  %v1404_v15 = vpop.f32.mrb[1].mxu0 }
 0x199   : > { %v588_v13 = vpop.f32.mrb[2].mxu1  ;;  %v522_v18 = vpop.f32.mrb[2].mxu0 }
 0x19a   : > { %v2172_v16 = vpack.c.bf16 %v586_v10, %v586_v10  ;;  %v1413_v17 = vpop.f32.mrb[3].mxu1  ;;  %v1405_v19 = vpop.f32.mrb[3].mxu0  ;;  %v591_v20 = vpack.c.bf16 %v520_v14, %v520_v14 }
 0x19c   : > { %817 = vrot.lane.b32.xlu1 %v2172_v16, %s1835_s18  ;;  %706 = vrot.lane.b32.xlu0 %v2172_v16, %s1836_s26  ;;  %v598_v21 = vsel %vm593_vm2, %v2172_v16, 0 }
 0x19d   : > { %1415 = vmatpush3.bf16.xpose.msra.mxu0 %v598_v21 }
 0x19e   : > { %1426 = vmatprep.subr.bf16.mxu0 %v1833_v0 }
 0x1a0   : > { %815 = vrot.lane.b32.xlu1 %v591_v20, %s1835_s18  ;;  %704 = vrot.lane.b32.xlu0 %v591_v20, %s1836_s26  ;;  %s2339_s26 = sld [smem:[#allocation22_spill]] }
 0x1a4   : > { %926 = vrot.lane.b32.xlu1 %v591_v20, %s1837_s3  ;;  %928 = vrot.lane.b32.xlu0 %v2172_v16, %s1837_s3  ;;  %s1341_s3 = sshll.u32 %s2129_s2, 3 }
 0x1a5   : > { %1417 = vmatmul.mubr.msk.bf16.vlgmr.msra.gmra.mrb[4].mxu0 %vm593_vm2, %v591_v20 }
 0x1a6   : > { %1428 = vmatprep.mubr.msk.bf16.mxu0 %vm1834_vm0, %v1833_v0 }
 0x20e   : > { %v707_v22 = vpop.permute.xlu0 %706  ;;  %v818_v24 = vpop.permute.xlu1 %817 }
 0x20f   : > { %v712_v23 = vsel %vm593_vm2, %v707_v22, 0  ;;  %v823_v26 = vsel %vm593_vm2, %v818_v24, 0 }
 0x210   : > { %1427 = vmatpush3.bf16.xpose.msra.mxu0 %v712_v23 }
 0x211   : > { %1438 = vmatprep.subr.bf16.mxu0 %v1833_v0 }
 0x212   : > { %v705_v25 = vpop.permute.xlu0 %704  ;;  %v816_v28 = vpop.permute.xlu1 %815 }
 0x216   : > { %v929_v27 = vpop.permute.xlu0 %928  ;;  %v927_v30 = vpop.permute.xlu1 %926 }
 0x217   : > { %1429 = vmatmul.mubr.msk.bf16.vlgmr.msra.gmra.mrb[8].mxu0 %vm593_vm2, %v705_v25  ;;  %v934_v29 = vsel %vm593_vm2, %v929_v27, 0 }
 0x218   : > { %1439 = vmatpush3.bf16.xpose.msra.mxu0 %v823_v26  ;;  %1440 = vmatprep.mubr.msk.bf16.mxu0 %vm1834_vm0, %v1833_v0 }
 0x219   : > { %1450 = vmatprep.subr.bf16.mxu0 %v1833_v0 }
 0x21f   : > { %1441 = vmatmul.mubr.msk.bf16.vlgmr.msra.gmra.mrb[12].mxu0 %vm593_vm2, %v816_v28 }
 0x220   : > { %1451 = vmatpush3.bf16.xpose.msra.mxu0 %v934_v29  ;;  %1452 = vmatprep.mubr.msk.bf16.mxu0 %vm1834_vm0, %v1833_v0 }
 0x221   : > { %1462 = vmatprep.subr.bf16.mxu0 %v1833_v0 }
 0x227   : > { %1453 = vmatmul.mubr.msk.bf16.vlgmr.msra.gmra.mrb[16].mxu0 %vm593_vm2, %v927_v30 }
 0x228   : > { %1466 = vmatprep.mubr.msk.bf16.mxu0 %vm1834_vm0, %v1833_v0 }
 0x278   : > { %v634_v31 = vpop.f32.mrb[4].mxu0 }
 0x279   : > { %v1418_v32 = vpop.f32.mrb[5].mxu0  ;;  %v640_v33 = vsel %vm593_vm2, %v634_v31, -inf }
 0x27a   : > { %641 = vmax.xlane.f32.xlu0 %v640_v33  ;;  %v637_v34 = vpop.f32.mrb[6].mxu0 }
 0x27b   : > { %v1419_v35 = vpop.f32.mrb[7].mxu0 }
 0x2ea   : > { %v748_v36 = vpop.f32.mrb[8].mxu0 }
 0x2eb   : > { %v1430_v37 = vpop.f32.mrb[9].mxu0  ;;  %v754_v38 = vsel %vm593_vm2, %v748_v36, -inf }
 0x2ec   : > { %755 = vmax.xlane.f32.xlu1 %v754_v38  ;;  %v751_v39 = vpop.f32.mrb[10].mxu0  ;;  %v1579_v38 = vld [vmem:[#allocation10 + $0x8] sm:$0xff]  }
 0x2ed   : > { %v1431_v40 = vpop.f32.mrb[11].mxu0 }
 0x2f2   : > { %v859_v41 = vpop.f32.mrb[12].mxu0 }
 0x2f3   : > { %v1442_v42 = vpop.f32.mrb[13].mxu0  ;;  %v865_v43 = vsel %vm593_vm2, %v859_v41, -inf }
 0x2f4   : > { %866 = vmax.xlane.f32.xlu0 %v865_v43  ;;  %v862_v44 = vpop.f32.mrb[14].mxu0 }
 0x2f5   : > { %v1443_v45 = vpop.f32.mrb[15].mxu0 }
 0x2fa   : > { %v970_v46 = vpop.f32.mrb[16].mxu0 }
 0x2fb   : > { %v1454_v47 = vpop.f32.mrb[17].mxu0  ;;  %v976_v48 = vsel %vm593_vm2, %v970_v46, -inf }
 0x2fc   : > { %977 = vmax.xlane.f32.xlu0 %v976_v48  ;;  %v973_v49 = vpop.f32.mrb[18].mxu0 }
 0x2fd   : > { %v1455_v50 = vpop.f32.mrb[19].mxu0 }
 0x307   : > { %v642_v51 = vpop.xlane.xlu0 %641 }
 0x308   : > { %v643_v52 = vsub.f32 %v634_v31, %v642_v51 }
 0x30a   : > { %v644_v53 = vmul.f32 1.442695, %v643_v52 }
 0x30c   : > { %1582 = vpow2.f32 %v644_v53 }
 0x316   : > { %v1583_v54 = vpop.eup %1582 }
 0x317   : > { %v646_v55 = vsel %vm593_vm2, %v1583_v54, 0.0 }
 0x318   : > { %647 = vadd.xlane.f32.xlu1 %v646_v55 }
 0x329   : > { %653 = vrot.lane.b32.xlu1 %v2172_v16, %s1838_s28  ;;  %s1367_s28 = sshll.u32 %s1922_s17, 7  ;;  %s1845_s17 = smov [#allocation11]  }
 0x32a   : > { %s1750_s21 = sshll.u32 %s1845_s17, 4  ;;  %s1751_s21 = int_to_ptr.vmem [resolvable:$false] %s1750_s21 }
 0x32b   : > { %s1752_s19 = scalar_lea.vmem %s1751_s21, 256 }
 0x379   : > { %v756_v56 = vpop.xlane.xlu1 %755 }
 0x37a   : > { %v757_v57 = vsub.f32 %v748_v36, %v756_v56  ;;  %v1578_v36 = vld [vmem:[#allocation10] sm:$0xff]  }
 0x37b   : > { %1463 = vmatpush3.bf16.msra.mxu0 %v1578_v36 }
 0x37c   : > { %v758_v58 = vmul.f32 1.442695, %v757_v57  ;;  %1464 = vmatprep.subr.bf16.mxu0 %v1833_v0 }
 0x37e   : > { %1584 = vpow2.f32 %v758_v58 }
 0x37f   : > { %1465 = vmatpush3.bf16.msra.mxu0 %v1579_v38 }
 0x381   : > { %v867_v59 = vpop.xlane.xlu0 %866 }
 0x382   : > { %v868_v60 = vsub.f32 %v859_v41, %v867_v59 }
 0x384   : > { %v869_v61 = vmul.f32 1.442695, %v868_v60  ;;  %v1580_v60 = vld [vmem:[%s2302_s5] sm:$0xff]  }
 0x386   : > { %1586 = vpow2.f32 %v869_v61  ;;  %v1581_v61 = vld [vmem:[%s2302_s5 + $0x8] sm:$0xff]  }
 0x388   : > { %v1585_v62 = vpop.eup %1584 }
 0x389   : > { %v978_v63 = vpop.xlane.xlu0 %977  ;;  %v760_v1 = vsel %vm593_vm2, %v1585_v62, 0.0 }
 0x38a   : > { %v979_v2 = vsub.f32 %v970_v46, %v978_v63  ;;  %761 = vadd.xlane.f32.xlu0 %v760_v1 }
 0x38c   : > { %v980_v3 = vmul.f32 1.442695, %v979_v2 }
 0x38e   : > { %1588 = vpow2.f32 %v980_v3 }
 0x390   : > { %v1587_v4 = vpop.eup %1586 }
 0x391   : > { %v871_v5 = vsel %vm593_vm2, %v1587_v4, 0.0 }
 0x392   : > { %872 = vadd.xlane.f32.xlu1 %v871_v5 }
 0x398   : > { %v1589_v6 = vpop.eup %1588 }
 0x399   : > { %v982_v7 = vsel %vm593_vm2, %v1589_v6, 0.0 }
 0x39a   : > { %983 = vadd.xlane.f32.xlu0 %v982_v7 }
 0x3a3   : > { %877 = vrot.lane.b32.xlu1 %v2172_v16, %s1839_s25  ;;  %s454_s25 = scalar_lea.vmem [#allocation11], %s1341_s3 }
 0x3a5   : > { %v648_v8 = vpop.xlane.xlu1 %647 }
 0x3a6   : > { %1590 = vrcp.f32 %v648_v8 }
 0x3a7   : > { %988 = vrot.lane.b32.xlu1 %v2172_v16, %s1840_s29  ;;  %s1204_s29 = sshll.u32 %s454_s25, 4  ;;  %s2254_s29 = int_to_ptr.vmem [resolvable:$true] %s1204_s29 }
 0x3a8   : > { %s1746_s24 = scalar_lea.vmem %s2254_s29, 128  ;;  %p1753_p0 = scmp.lt.s32.totalorder %s2254_s29, %s1751_s21 }
 0x3a9   : > { %v654_v9 = vpop.permute.xlu1 %653  ;;  %p1747_p12 = scmp.ne.s32.totalorder %s2254_s29, %s1746_s24  ;;  %p1754_p8 = scmp.lt.s32.totalorder %s1752_s19, %s1746_s24 }
 0x3aa   : > { %v660_v10 = vsel %vm658_vm3, %v654_v9, 0 }
 0x3ab   : > { %1421 = vmatpush3.bf16.msra.mxu1 %v660_v10  ;;  %p1748_p2 = pnand %p1747_p12, %p2341_p1  ;;  %p1755_p6 = por %p1754_p8, %p1753_p0 }
 0x3ac   : > { %1432 = vmatprep.subr.bf16.mxu1 %v1833_v0 }
 0x3ad   : > { %p1749_p4 = pneg %p1748_p2 }
 0x3af   : > { %p1756_p10 = pnand %p1755_p6, %p1749_p4 }
 0x3b0   : > { %v1591_v11 = vpop.eup %1590  ;;  %766 = vrot.lane.b32.xlu0 %v2172_v16, %s1841_s10 }
 0x3b1   : > { %v650_v12 = vmul.f32 %v1591_v11, %v1583_v54 }
 0x3b3   : > { %v651_v13 = vpack.c.bf16 %v650_v12, %v650_v12 }
 0x3b5   : > { %1423 = vmatmul.mubr.msk.bf16.vlgmr.msra.gmra.mrb[4].mxu1 %vm593_vm2, %v651_v13 }
 0x3b6   : > { %1434 = vmatprep.mubr.msk.bf16.mxu1 %vm1834_vm0, %v1833_v0 }
 0x417   : > { %v762_v14 = vpop.xlane.xlu0 %761 }
 0x418   : > { %1592 = vrcp.f32 %v762_v14 }
 0x41f   : > { %v873_v15 = vpop.xlane.xlu1 %872 }
 0x420   : > { %1594 = vrcp.f32 %v873_v15 }
 0x422   : > { %v1593_v17 = vpop.eup %1592 }
 0x423   : > { %v764_v19 = vmul.f32 %v1593_v17, %v1585_v62  ;;  %v878_v22 = vpop.permute.xlu1 %877  ;;  %v1358_v62 = vld [vmem:[%s2305_s8] ss:$0 sm:$0xff] }
 0x424   : > { %v883_v24 = vsel %vm658_vm3, %v878_v22, 0 }
 0x425   : > { %v765_v16 = vpack.c.bf16 %v764_v19, %v764_v19 }
 0x427   : > { %v984_v18 = vpop.xlane.xlu0 %983  ;;  %v989_v26 = vpop.permute.xlu1 %988 }
 0x428   : > { %1596 = vrcp.f32 %v984_v18  ;;  %v994_v29 = vsel %vm658_vm3, %v989_v26, 0 }
 0x42a   : > { %v1595_v23 = vpop.eup %1594 }
 0x42b   : > { %v767_v20 = vpop.permute.xlu0 %766  ;;  %v875_v25 = vmul.f32 %v1595_v23, %v1587_v4 }
 0x42c   : > { %v772_v21 = vsel %vm658_vm3, %v767_v20, 0 }
 0x42d   : > { %1433 = vmatpush3.bf16.msra.mxu1 %v772_v21  ;;  %v876_v27 = vpack.c.bf16 %v875_v25, %v875_v25 }
 0x42e   : > { %1444 = vmatprep.subr.bf16.mxu1 %v1833_v0 }
 0x430   : > { %1435 = vmatmul.mubr.msk.bf16.vlgmr.msra.gmra.mrb[8].mxu1 %vm593_vm2, %v765_v16 }
 0x431   : > { %1445 = vmatpush3.bf16.msra.mxu1 %v883_v24  ;;  %1446 = vmatprep.mubr.msk.bf16.mxu1 %vm1834_vm0, %v1833_v0 }
 0x432   : > { %1456 = vmatprep.subr.bf16.mxu1 %v1833_v0  ;;  %v1597_v28 = vpop.eup %1596 }
 0x433   : > { %v986_v30 = vmul.f32 %v1597_v28, %v1589_v6 }
 0x435   : > { %v987_v31 = vpack.c.bf16 %v986_v30, %v986_v30 }
 0x438   : > { %1447 = vmatmul.mubr.msk.bf16.vlgmr.msra.gmra.mrb[12].mxu1 %vm593_vm2, %v876_v27 }
 0x439   : > { %1457 = vmatpush3.bf16.msra.mxu1 %v994_v29  ;;  %1458 = vmatprep.mubr.msk.bf16.mxu1 %vm1834_vm0, %v1833_v0 }
 0x43a   : > { %1470 = vmatprep.subr.bf16.mxu1 %v1833_v0 }
 0x440   : > { %1459 = vmatmul.mubr.msk.bf16.vlgmr.msra.gmra.mrb[16].mxu1 %vm593_vm2, %v987_v31 }
 0x441   : > { %1474 = vmatprep.mubr.msk.bf16.mxu1 %vm1834_vm0, %v1833_v0  ;;  %1471 = vmatpush3.bf16.msra.mxu1 %v1580_v60 }
 0x442   : > { %1472 = vmatprep.subr.bf16.mxu1 %v1833_v0  ;;  %v1362_v0 = vld [vmem:[%s2339_s26] ss:$0 sm:$0xff] }
 0x445   : > { %1473 = vmatpush3.bf16.msra.mxu1 %v1581_v61 }
 0x488   : > { %v696_v32 = vpop.f32.mrb[4].mxu1 }
 0x489   : > { %v1424_v33 = vpop.f32.mrb[5].mxu1  ;;  %v702_v54 = vpack.c.bf16 %v696_v32, %v696_v32 }
 0x48a   : > { %v699_v34 = vpop.f32.mrb[6].mxu1 }
 0x48b   : > { %v1425_v35 = vpop.f32.mrb[7].mxu1 }
 0x503   : > { %v808_v37 = vpop.f32.mrb[8].mxu1 }
 0x504   : > { %v814_v39 = vpack.c.bf16 %v808_v37, %v808_v37  ;;  %v1436_v40 = vpop.f32.mrb[9].mxu1 }
 0x505   : > { %v811_v41 = vpop.f32.mrb[10].mxu1 }
 0x506   : > { %1038 = vrot.lane.b32.xlu0 %v814_v39, %s1842_s4  ;;  %v1437_v42 = vpop.f32.mrb[11].mxu1 }
 0x50b   : > { %v919_v43 = vpop.f32.mrb[12].mxu1 }
 0x50c   : > { %v925_v44 = vpack.c.bf16 %v919_v43, %v919_v43  ;;  %v1448_v45 = vpop.f32.mrb[13].mxu1 }
 0x50d   : > { %v922_v46 = vpop.f32.mrb[14].mxu1 }
 0x50e   : > { %1041 = vrot.lane.b32.xlu1 %v925_v44, %s1843_s11  ;;  %v1449_v47 = vpop.f32.mrb[15].mxu1  ;;  %s2340_s11 = sld [smem:[#allocation23_spill]] }
 0x513   : > { %v1030_v48 = vpop.f32.mrb[16].mxu1 }
 0x514   : > { %v1036_v49 = vpack.c.bf16 %v1030_v48, %v1030_v48  ;;  %v1460_v50 = vpop.f32.mrb[17].mxu1 }
 0x515   : > { %v1033_v51 = vpop.f32.mrb[18].mxu1 }
 0x516   : > { %1044 = vrot.lane.b32.xlu0 %v1036_v49, %s1844_s27  ;;  %v1461_v52 = vpop.f32.mrb[19].mxu1  ;;  %s2252_s27 = scalar_lea.hbm %s2340_s11, %s1367_s28 }
 0x578   : > { %v1039_v53 = vpop.permute.xlu0 %1038 }
 0x579   : > { %v1048_v56 = vsel %vm593_vm2, %v702_v54, %v1039_v53 }
 0x580   : > { %v1042_v55 = vpop.permute.xlu1 %1041 }
 0x581   : > { %v1051_v57 = vsel %vm1049_vm4, %v1048_v56, %v1042_v55 }
 0x588   : > { %v1045_v58 = vpop.permute.xlu0 %1044 }
 0x589   : > { %v1054_v59 = vsel %vm1052_vm5, %v1051_v57, %v1045_v58 }
 0x58a   : > { %1467 = vmatmul.mubr.msk.bf16.vlgmr.msra.gmra.mrb[20].mxu0 %vm481_vm1, %v1054_v59 }
 0x65d   : > { %v1114_v63 = vpop.f32.mrb[20].mxu0 }
 0x65e   : > { %v1115_v1 = vadd.f32 %v1358_v62, %v1114_v63  ;;  %v1468_v2 = vpop.f32.mrb[21].mxu0 }
 0x65f   : > { %v1117_v3 = vpop.f32.mrb[22].mxu0 }
 0x660   : > { %1598 = vtanh.f32 %v1115_v1  ;;  %v1469_v4 = vpop.f32.mrb[23].mxu0 }
 0x66a   : > { %v1599_v5 = vpop.eup %1598 }
 0x66b   : > { %v1121_v6 = vpack.c.bf16 %v1599_v5, %v1599_v5 }
 0x66d   : > { %1475 = vmatmul.mubr.msk.bf16.vlgmr.msra.gmra.mrb[20].mxu1 %vm481_vm1, %v1121_v6 }
 0x740   : > { %v1182_v7 = vpop.f32.mrb[20].mxu1 }
 0x741   : > { %v1183_v8 = vadd.f32 %v1362_v0, %v1182_v7  ;;  %v1476_v9 = vpop.f32.mrb[21].mxu1 }
 0x742   : > { %v1185_v10 = vpop.f32.mrb[22].mxu1 }
 0x743   : > { %1600 = vtanh.f32 %v1183_v8  ;;  %v1477_v11 = vpop.f32.mrb[23].mxu1 }
 0x74d   : > { %v1601_v12 = vpop.eup %1600 }
 0x74e   : > { %1189 = vst.msk [vmem:[%s454_s25] sm:$0xff] %vm481_vm1, %v1601_v12 }
 0x74f   : > { %1759 = shalt.err (!%p1756_p10)
}
 0x750   : > { %s1760_s2 = scalar_lea.hbm %s2252_s27, 128  ;;  %s1764_s12 = scalar_lea.hbm %s2340_s11, 256 }
 0x751   : > { %p1761_p13 = scmp.ne.s32.totalorder %s2252_s27, %s1760_s2  ;;  %p1765_p11 = scmp.lt.u32.totalorder %s2252_s27, %s2340_s11 }
 0x752   : > { %p1766_p3 = scmp.lt.u32.totalorder %s1764_s12, %s1760_s2  ;;  %p1768_p12 = scmp.lt.u32.totalorder %s1760_s2, %s2252_s27 }
 0x753   : > { %p1762_p9 = pnand %p1761_p13, %p2341_p1 }
 0x754   : > { %p1767_p7 = por %p1766_p3, %p1765_p11 }
 0x755   : > { %p1763_p5 = pneg %p1762_p9 }
 0x756   : > { %p1769_p2 = por %p1768_p12, %p1767_p7 }
 0x758   : > { %p1770_p4 = pnand %p1769_p2, %p1763_p5 }
 0x75a   : > { %1773 = shalt.err (!%p1770_p4)
}
 0x75b   : > { %1494 = dma.vmem_to_hbm [thread:$0]  (%p2341_p1), %s2254_s29, 128, %s2252_s27, %s1191_s23  }
 0x75c PF: > { %s2342_s3 = sld [smem:[#allocation17_spill]]  ;;  %s2343_s28 = sld [smem:[#allocation18_spill]] }
 0x75d   : > { %p2345_p8 = scmp.ge.s32.totalorder %s1824_s16, 2 }
 0x762   : > { %s1216_s25 = sand.u32 1, %s2342_s3   ;;  %p2344_p0 = scmp.ne.s32.totalorder %s2343_s28, 0 }
 0x763   : > { %s1217_s10 = scalar_lea.sflag [#allocation4], %s1216_s25 }
 0x764   : > { %p1514_p6 = pnand %p2345_p8, %p2344_p0 }
 0x766   : > { %1807 = dma.done.wait (!%p1514_p6), %s1217_s10, 128  }
 0x767   : > { %1809 = vsyncadd (!%p1514_p6), %s1217_s10, 4294967168  ;;  %s2346_s4 = smov %s2051_s13  ;;  %p27_p10 = scmp.ge.s32.totalorder %s2041_s22, 4  }
 0x768   : > { %s2347_s13 = smov %s1816_s14  ;;  %s2348_s14 = smov %s1820_s15 }
 0x769   : > { %s2349_s15 = smov %s2346_s4  ;;  %s2350_s16 = smov %s2041_s22 }
 0x76a   :  { %29 = sbr.rel (!%p27_p10) target bundleno = 14 (0xe), region = 130 }
 0x771   :  { %1222 = vsyncpa [#allocation3], 1 }
 0x772   :  { %1224 = vsyncpa [#allocation3 + $0x1], 1 }
 0x773   :  { %1225 = vsyncpa [#allocation6], 1 }
 0x774   :  { %1227 = vsyncpa [#allocation6 + $0x1], 1 }
 0x775   :  { %1228 = vsyncpa [#allocation9], 1 }
 0x776   :  { %1229 = vsyncpa [#allocation4], 1 }
 0x777   :  { %1231 = vsyncpa [#allocation4 + $0x1], 1 }

</bundles_post_ra>
